<compile_context>
chip_gen: v6e
topology: v6e:2x2x1
jax: 0.10.0
libtpu: 0.0.40
codegen_flags: <defaults>
</compile_context>

<pallas_src>
import math
import jax
import jax.numpy as jnp
from jax.experimental import pallas as pl
from jax.experimental.pallas import tpu as pltpu


def valuenet_kernel(x_ref, w1_ref, b1_ref, w2_ref, b2_ref, w3t_ref, b3_ref, o_ref):
    cdt = w1_ref.dtype

    # ---- Layer 1: MXU dot (f32 accumulate).  The streamed f32 x tile is cast to the
    # MXU dtype in-kernel (a few VPU ops hidden under MXU work, not an HBM pass).
    x = x_ref[...].astype(cdt)
    h1 = jnp.dot(x, w1_ref[...], preferred_element_type=jnp.float32)
    if b1_ref.dtype == cdt and cdt != jnp.float32:
        # bf16 epilogue (v6e/v7x bf16 VALU): the cast to cdt is needed for layer-2's
        # MXU input anyway, so bias-add + ReLU ride in half-width vregs.
        h1 = jnp.maximum(h1.astype(cdt) + b1_ref[...], 0.0)
    else:
        # f32 epilogue (v5e path: no bf16 VALU); cast afterwards for layer 2's MXU.
        h1 = jnp.maximum(h1 + b1_ref[...], 0.0).astype(cdt)

    # ---- Layer 2: MXU dot, f32 epilogue (its output feeds the VPU head, not the MXU).
    h2 = jnp.dot(h1, w2_ref[...], preferred_element_type=jnp.float32) + b2_ref[...]
    h2 = jnp.maximum(h2, 0.0)

    # ---- Layer 3 (out_dim == 1): VPU multiply + XLU lane reduce instead of a third
    # MXU pass that would produce only one useful column.
    out = jnp.sum(h2 * w3t_ref[...], axis=-1, keepdims=True) + b3_ref[...]   # (TB, 1)

    # Lane-dense writeback: (TB,1) -> (1,TB) so the store is a full-width vst instead
    # of TB/8 masked 1-of-128-lane partial stores.
    o_ref[...] = jnp.transpose(out).astype(o_ref.dtype)


def _round_up(n, m):
    return ((n + m - 1) // m) * m


def _choose_batch_tile(B, block_rows):
    """Pick (TB, Bp): per-grid-step row tile and the padded batch size."""
    if B < 256:
        # Small batch: a single tile (the whole problem is launch-latency bound).
        TB = _round_up(B, 8)
        return TB, TB
    # >= 2 grid steps so the "parallel" axis shards across v7x's two TensorCores,
    # TB a multiple of 128 (lane-dense output block) and capped by block_rows; sizing
    # from cdiv(B, steps) keeps padding waste bounded by one tile.
    steps = max(2, pl.cdiv(B, block_rows))
    TB = min(block_rows, _round_up(pl.cdiv(B, steps), 128))
    return TB, TB * pl.cdiv(B, TB)


def value_net_forward(x, params, *, block_rows=2048, compute_dtype=jnp.bfloat16,
                      layer1_bf16_epilogue=True):
    """x: (B, in_features) f32.  params: (w1, b1, w2, b2, w3, b3), weights (in, out)."""
    w1, b1, w2, b2, w3, b3 = params
    B, in_features = x.shape
    hidden = w1.shape[1]
    cdt = jnp.dtype(compute_dtype)

    TB, Bp = _choose_batch_tile(B, _round_up(block_rows, 128))
    if Bp != B:
        # Padded rows produce garbage (relu(b1)->...) but are sliced off below.
        x = jnp.pad(x, ((0, Bp - B), (0, 0)))

    # Weights/biases prepared once; constant index maps keep them VMEM-resident.
    w1_c = w1.astype(cdt)
    w2_c = w2.astype(cdt)
    use_bf16_epi = layer1_bf16_epilogue and cdt != jnp.dtype(jnp.float32)
    b1_p = b1.astype(cdt if use_bf16_epi else jnp.float32)
    b2_f = b2.astype(jnp.float32)
    w3t = jnp.transpose(w3).astype(jnp.float32)            # (1, hidden) — VPU/XLU head
    b3_f = b3.astype(jnp.float32)

    const = lambda shape: pl.BlockSpec(shape, lambda i: tuple(0 for _ in shape))

    flops = 2 * Bp * (in_features * hidden + hidden * hidden + hidden)
    bytes_accessed = (
        Bp * in_features * 4                                        # streamed x (f32)
        + (in_features * hidden + hidden * hidden) * cdt.itemsize   # resident W1, W2
        + hidden * b1_p.dtype.itemsize + (2 * hidden + 1) * 4       # b1, b2, w3t, b3
        + Bp * 4)                                                   # output

    # Scoped-VMEM budget: only matters if block_rows is cranked way up (v5e defaults to
    # 16 MiB scoped); capped at 64 MiB so it never exceeds v7x's physical VMEM.
    vmem_est = 2 * (2 * TB * in_features * 4 + 2 * TB * 4
                    + (in_features * hidden + hidden * hidden) * cdt.itemsize
                    + 4 * TB * hidden * 4)
    vmem_limit = int(min(max(vmem_est, 16 << 20), 64 << 20))

    out = pl.pallas_call(
        valuenet_kernel,
        out_shape=jax.ShapeDtypeStruct((1, Bp), jnp.float32),
        grid=(Bp // TB,),
        in_specs=[
            pl.BlockSpec((TB, in_features), lambda i: (i, 0)),      # x: streamed tiles
            const(w1_c.shape), const(b1_p.shape),                   # resident params
            const(w2_c.shape), const(b2_f.shape),
            const(w3t.shape), const(b3_f.shape),
        ],
        out_specs=pl.BlockSpec((1, TB), lambda i: (0, i)),          # lane-dense output
        compiler_params=pltpu.CompilerParams(
            dimension_semantics=("parallel",),                      # megacore on v7x
            vmem_limit_bytes=vmem_limit),
        cost_estimate=pl.CostEstimate(
            flops=flops, transcendentals=0, bytes_accessed=bytes_accessed),
    )(x, w1_c, b1_p, w2_c, b2_f, w3t, b3_f)

    return jnp.transpose(out)[:B]                                   # (B, 1)


def init_linear_params(key, fan_in, fan_out):
    # Mimic torch.nn.Linear default init: U(-1/sqrt(fan_in), 1/sqrt(fan_in)).
    kw, kb = jax.random.split(key)
    bound = 1.0 / math.sqrt(fan_in)
    # Stored (in, out) so forward is x @ W (PyTorch stores (out, in) and does x @ W.T).
    w = jax.random.uniform(kw, (fan_in, fan_out), jnp.float32, -bound, bound)
    b = jax.random.uniform(kb, (1, fan_out), jnp.float32, -bound, bound)
    return w, b


if __name__ == "__main__":
    key = jax.random.PRNGKey(0)
    k_x, k1, k2, k3 = jax.random.split(key, 4)

    batch = 8
    in_features = 16
    hidden = 128            # ValueNet default hidden_size (also MXU/lane friendly)

    x = jax.random.normal(k_x, (batch, in_features), jnp.float32)

    w1, b1 = init_linear_params(k1, in_features, hidden)
    w2, b2 = init_linear_params(k2, hidden, hidden)
    w3, b3 = init_linear_params(k3, hidden, 1)
    params = (w1, b1, w2, b2, w3, b3)

    # NOTE: at this tiny size the kernel is pure fixed overhead; the Pallas path only
    # pays off at large batches (thousands of rows).
    out = jax.block_until_ready(value_net_forward(x, params))
    assert out.shape == (batch, 1)

    # Reference with the kernel's exact numerics (bf16 MXU operands, f32 accumulate,
    # bf16 layer-1 epilogue) — tight tolerance.
    cdt = jnp.bfloat16
    h1 = jnp.dot(x.astype(cdt), w1.astype(cdt), preferred_element_type=jnp.float32)
    h1 = jnp.maximum(h1.astype(cdt) + b1.astype(cdt), 0.0)
    h2 = jnp.maximum(
        jnp.dot(h1, w2.astype(cdt), preferred_element_type=jnp.float32) + b2, 0.0)
    ref = jnp.sum(h2 * w3.T, axis=-1, keepdims=True) + b3
    assert bool(jnp.allclose(out, ref, atol=1e-3, rtol=1e-3))

    # Loose sanity check against the full-f32 (PyTorch-equivalent) forward: bf16 MXU
    # operands diverge from f32 by ~1e-3..1e-2 relative.
    h1f = jnp.maximum(x @ w1 + b1, 0.0)
    h2f = jnp.maximum(h1f @ w2 + b2, 0.0)
    ref_f32 = h2f @ w3 + b3
    assert bool(jnp.allclose(out, ref_f32, atol=5e-2, rtol=5e-2))

    print("KERNEL_OK")
</pallas_src>

<mosaic_0001>
module attributes {stable_mosaic.version = 11 : i64} {
  func.func @valuenet_kernel(%arg0: i32, %arg1: memref<8x16xf32, #tpu.memory_space<vmem>>, %arg2: memref<16x128xbf16, #tpu.memory_space<vmem>>, %arg3: memref<1x128xbf16, #tpu.memory_space<vmem>>, %arg4: memref<128x128xbf16, #tpu.memory_space<vmem>>, %arg5: memref<1x128xf32, #tpu.memory_space<vmem>>, %arg6: memref<1x128xf32, #tpu.memory_space<vmem>>, %arg7: memref<1x1xf32, #tpu.memory_space<vmem>>, %arg8: memref<1x8xf32, #tpu.memory_space<vmem>>) attributes {dimension_semantics = [#tpu.dimension_semantics<parallel>], iteration_bounds = array<i64: 1>, scalar_prefetch = 0 : i64, scratch_operands = 0 : i64, tpu.core_type = #tpu.core_type<tc>, window_params = [{transform_indices = @transform_0, window_bounds = array<i64: 8, 16>}, {pipeline_mode = #tpu.pipeline_mode<synchronous>, transform_indices = @transform_1, window_bounds = array<i64: 16, 128>}, {pipeline_mode = #tpu.pipeline_mode<synchronous>, transform_indices = @transform_2, window_bounds = array<i64: 1, 128>}, {pipeline_mode = #tpu.pipeline_mode<synchronous>, transform_indices = @transform_3, window_bounds = array<i64: 128, 128>}, {pipeline_mode = #tpu.pipeline_mode<synchronous>, transform_indices = @transform_4, window_bounds = array<i64: 1, 128>}, {pipeline_mode = #tpu.pipeline_mode<synchronous>, transform_indices = @transform_5, window_bounds = array<i64: 1, 128>}, {pipeline_mode = #tpu.pipeline_mode<synchronous>, transform_indices = @transform_6, window_bounds = array<i64: 1, 1>}, {transform_indices = @transform_7, window_bounds = array<i64: 1, 8>}]} {
    %c0 = arith.constant 0 : index
    %c0_0 = arith.constant 0 : index
    %0 = vector.load %arg1[%c0, %c0_0] : memref<8x16xf32, #tpu.memory_space<vmem>>, vector<8x16xf32>
    %1 = arith.truncf %0 : vector<8x16xf32> to vector<8x16xbf16>
    %c0_1 = arith.constant 0 : index
    %c0_2 = arith.constant 0 : index
    %2 = vector.load %arg2[%c0_1, %c0_2] : memref<16x128xbf16, #tpu.memory_space<vmem>>, vector<16x128xbf16>
    %cst = arith.constant dense<0.000000e+00> : vector<8x128xf32>
    %3 = tpu.matmul %1, %2, %cst {dimension_numbers = #tpu.dot_dimension_numbers<[1], [0], [0], [1], [0, 0, 1, 1], [], []>} : vector<8x16xbf16>, vector<16x128xbf16>, vector<8x128xf32> -> vector<8x128xf32>
    %4 = arith.truncf %3 : vector<8x128xf32> to vector<8x128xbf16>
    %c0_3 = arith.constant 0 : index
    %c0_4 = arith.constant 0 : index
    %5 = vector.load %arg3[%c0_3, %c0_4] : memref<1x128xbf16, #tpu.memory_space<vmem>>, vector<1x128xbf16>
    %6 = vector.broadcast %5 : vector<1x128xbf16> to vector<8x128xbf16>
    %7 = arith.addf %4, %6 : vector<8x128xbf16>
    %cst_5 = arith.constant 0.000000e+00 : bf16
    %8 = vector.broadcast %cst_5 : bf16 to vector<8x128xbf16>
    %9 = arith.maximumf %7, %8 : vector<8x128xbf16>
    %c0_6 = arith.constant 0 : index
    %c0_7 = arith.constant 0 : index
    %10 = vector.load %arg4[%c0_6, %c0_7] : memref<128x128xbf16, #tpu.memory_space<vmem>>, vector<128x128xbf16>
    %cst_8 = arith.constant dense<0.000000e+00> : vector<8x128xf32>
    %11 = tpu.matmul %9, %10, %cst_8 {dimension_numbers = #tpu.dot_dimension_numbers<[1], [0], [0], [1], [0, 0, 1, 1], [], []>} : vector<8x128xbf16>, vector<128x128xbf16>, vector<8x128xf32> -> vector<8x128xf32>
    %c0_9 = arith.constant 0 : index
    %c0_10 = arith.constant 0 : index
    %12 = vector.load %arg5[%c0_9, %c0_10] : memref<1x128xf32, #tpu.memory_space<vmem>>, vector<1x128xf32>
    %13 = vector.broadcast %12 : vector<1x128xf32> to vector<8x128xf32>
    %14 = arith.addf %11, %13 : vector<8x128xf32>
    %cst_11 = arith.constant 0.000000e+00 : f32
    %15 = vector.broadcast %cst_11 : f32 to vector<8x128xf32>
    %16 = arith.maximumf %14, %15 : vector<8x128xf32>
    %c0_12 = arith.constant 0 : index
    %c0_13 = arith.constant 0 : index
    %17 = vector.load %arg6[%c0_12, %c0_13] : memref<1x128xf32, #tpu.memory_space<vmem>>, vector<1x128xf32>
    %18 = vector.broadcast %17 : vector<1x128xf32> to vector<8x128xf32>
    %19 = arith.mulf %16, %18 : vector<8x128xf32>
    %cst_14 = arith.constant dense<0.000000e+00> : vector<8xf32>
    %20 = vector.multi_reduction <add>, %19, %cst_14 [1] : vector<8x128xf32> to vector<8xf32>
    %21 = vector.shape_cast %20 : vector<8xf32> to vector<8x1xf32>
    %c0_15 = arith.constant 0 : index
    %c0_16 = arith.constant 0 : index
    %22 = vector.load %arg7[%c0_15, %c0_16] : memref<1x1xf32, #tpu.memory_space<vmem>>, vector<1x1xf32>
    %23 = vector.broadcast %22 : vector<1x1xf32> to vector<8x1xf32>
    %24 = arith.addf %21, %23 : vector<8x1xf32>
    %25 = tpu.transpose %24, [1, 0] : vector<8x1xf32> -> vector<1x8xf32>
    %c0_17 = arith.constant 0 : index
    %c0_18 = arith.constant 0 : index
    %26 = vector.load %arg8[%c0_17, %c0_18] : memref<1x8xf32, #tpu.memory_space<vmem>>, vector<1x8xf32>
    tpu.vector_store %arg8[%c0_17, %c0_18], %25 {strides = array<i32>} : memref<1x8xf32, #tpu.memory_space<vmem>>, vector<1x8xf32>,
    return
  }
  func.func @transform_0(%arg0: i32) -> (i32, i32) {
    %c0_i32 = arith.constant 0 : i32
    %c0_i32_0 = arith.constant 0 : i32
    return %arg0, %c0_i32 : i32, i32
  }
  func.func @transform_1(%arg0: i32) -> (i32, i32) {
    %c0_i32 = arith.constant 0 : i32
    %c0_i32_0 = arith.constant 0 : i32
    %c0_i32_1 = arith.constant 0 : i32
    return %c0_i32, %c0_i32_0 : i32, i32
  }
  func.func @transform_2(%arg0: i32) -> (i32, i32) {
    %c0_i32 = arith.constant 0 : i32
    %c0_i32_0 = arith.constant 0 : i32
    %c0_i32_1 = arith.constant 0 : i32
    return %c0_i32, %c0_i32_0 : i32, i32
  }
  func.func @transform_3(%arg0: i32) -> (i32, i32) {
    %c0_i32 = arith.constant 0 : i32
    %c0_i32_0 = arith.constant 0 : i32
    %c0_i32_1 = arith.constant 0 : i32
    return %c0_i32, %c0_i32_0 : i32, i32
  }
  func.func @transform_4(%arg0: i32) -> (i32, i32) {
    %c0_i32 = arith.constant 0 : i32
    %c0_i32_0 = arith.constant 0 : i32
    %c0_i32_1 = arith.constant 0 : i32
    return %c0_i32, %c0_i32_0 : i32, i32
  }
  func.func @transform_5(%arg0: i32) -> (i32, i32) {
    %c0_i32 = arith.constant 0 : i32
    %c0_i32_0 = arith.constant 0 : i32
    %c0_i32_1 = arith.constant 0 : i32
    return %c0_i32, %c0_i32_0 : i32, i32
  }
  func.func @transform_6(%arg0: i32) -> (i32, i32) {
    %c0_i32 = arith.constant 0 : i32
    %c0_i32_0 = arith.constant 0 : i32
    %c0_i32_1 = arith.constant 0 : i32
    return %c0_i32, %c0_i32_0 : i32, i32
  }
  func.func @transform_7(%arg0: i32) -> (i32, i32) {
    %c0_i32 = arith.constant 0 : i32
    %c0_i32_0 = arith.constant 0 : i32
    return %c0_i32, %arg0 : i32, i32
  }
}

</mosaic_0001>

<bundles_post_ra>
// kernel: tpu_custom_call.1
= control target key start
LH: loop header
LB: loop body
LE: loop exit
PB: predicated region body
PF: predicated region fallthrough
CT: control target
= control target key end

     0   :  { %s541_s0 = inlined_call_operand.hbm [shape: f32[8,16], index: 0, kind: input, shape index: {}]   ;;  %s542_s1 = inlined_call_operand.hbm [shape: bf16[16,128], index: 1, kind: input, shape index: {}]   ;;  %s543_s2 = inlined_call_operand.vmem [shape: bf16[1,128], index: 2, kind: input, shape index: {}]   ;;  %s544_s3 = inlined_call_operand.hbm [shape: bf16[128,128], index: 3, kind: input, shape index: {}]   ;;  %s545_s4 = inlined_call_operand.vmem [shape: f32[1,128], index: 4, kind: input, shape index: {}]   ;;  %s546_s5 = inlined_call_operand.vmem [shape: f32[1,128], index: 5, kind: input, shape index: {}]   ;;  %s547_s6 = inlined_call_operand.<no memory space> [shape: f32[1,1], index: 6, kind: input, shape index: {}]   ;;  %s548_s7 = inlined_call_operand.hbm [shape: f32[1,8], index: 7, kind: output, shape index: {}]  }
   0x1   :  { %v12_v0 = vstv %s547_s6 }
   0x2   :  { %13 = vst [vmem:[#allocation2] sm:$0x1] %v12_v0 }
   0x3   :  { %14 = vsyncpa [#allocation4], 0 }
   0x4   :  { %15 = vsyncpa [#allocation7], 0 }
   0x5   :  { %16 = vsyncpa [#allocation5], 0  ;;  %s468_s26 = smov [#allocation6]  }
   0x6   :  { %s32_s27 = sshll.u32 %s468_s26, 4  ;;  %s33_s27 = int_to_ptr.vmem [resolvable:$true] %s32_s27 }
   0x7   :  { %s390_s28 = scalar_lea.vmem %s33_s27, 128  ;;  %p395_p1 = scmp.lt.s32.totalorder %s33_s27, %s33_s27 }
   0x8   :  { %p391_p0 = scmp.ne.s32.totalorder %s33_s27, %s390_s28  ;;  %p396_p2 = scmp.lt.s32.totalorder %s390_s28, %s390_s28 }
   0xa   :  { %p397_p3 = por %p396_p2, %p395_p1 }
   0xc   :  { %p398_p4 = pnand %p397_p3, %p391_p0 }
   0xe   :  { %401 = shalt.err (!%p398_p4)
}
   0xf   :  { %s469_s29 = smov 64   ;;  %s470_s30 = smov 4  }
  0x10   :  { %38 = dma.hbm_to_vmem [thread:$0]  %s542_s1, 128, %s33_s27, [#allocation7], %s469_s29, %s469_s29, %s470_s30  }
  0x11   :  { %s471_s6 = smov [#allocation3]   ;;  %s472_s11 = smov [#allocation8]  }
  0x12   :  { %s23_s10 = sshll.u32 %s471_s6, 4  ;;  %s46_s12 = sshll.u32 %s472_s11, 4  ;;  %s24_s10 = int_to_ptr.vmem [resolvable:$true] %s23_s10  ;;  %s47_s12 = int_to_ptr.vmem [resolvable:$true] %s46_s12 }
  0x13   :  { %s410_s13 = scalar_lea.vmem %s24_s10, 128  ;;  %p415_p6 = scmp.lt.s32.totalorder %s24_s10, %s24_s10 }
  0x14   :  { %p411_p5 = scmp.ne.s32.totalorder %s24_s10, %s410_s13  ;;  %p416_p7 = scmp.lt.s32.totalorder %s410_s13, %s410_s13 }
  0x16   :  { %p417_p8 = por %p416_p7, %p415_p6 }
  0x18   :  { %p418_p9 = pnand %p417_p8, %p411_p5 }
  0x1a   :  { %421 = shalt.err (!%p418_p9)
}
  0x1b   :  { %26 = dma.hbm_to_vmem [thread:$0]  %s541_s0, 128, %s24_s10, [#allocation4]  }
  0x1c   :  { %s430_s16 = scalar_lea.vmem %s47_s12, 1024  ;;  %p435_p11 = scmp.lt.s32.totalorder %s47_s12, %s47_s12 }
  0x1d   :  { %p431_p10 = scmp.ne.s32.totalorder %s47_s12, %s430_s16  ;;  %p436_p12 = scmp.lt.s32.totalorder %s430_s16, %s430_s16 }
  0x1f   :  { %p437_p13 = por %p436_p12, %p435_p11 }
  0x21   :  { %p438_p0 = pnand %p437_p13, %p431_p10 }
  0x23   :  { %441 = shalt.err (!%p438_p0)
}
  0x24   :  { %52 = dma.hbm_to_vmem [thread:$0]  %s544_s3, 1024, %s47_s12, [#allocation7], %s469_s29, %s469_s29, %s470_s30  }
  0x25   :  { %462 = dma.done.wait [#allocation4], 128  }
  0x26   :  { %463 = vsyncadd [#allocation4], 4294967168 }
  0x27   :  { %464 = dma.done.wait [#allocation7], 1152  }
  0x28   :  { %465 = vsyncadd [#allocation7], 4294966144  ;;  %v473_v1 = vmov 0.0   ;;  %vm474_vm0 = vmmov 0   ;;  %v373_v2 = vld [vmem:[#allocation6] sm:$0xff]   ;;  %v69_v3 = vld [vmem:[#allocation3] sm:$0xff]  ;;  %v128_v13 = vlaneseq }
  0x29   :  { %338 = vmatprep.subr.bf16.mxu0 %v473_v1  ;;  %340 = vmatprep.mubr.msk.bf16.mxu0 %vm474_vm0, %v473_v1  ;;  %v70_v4 = vpack.c.bf16 %v69_v3, %v69_v3  ;;  %vm79_vm1 = vcmask 130048   ;;  %v374_v5 = vld [vmem:[#allocation8 + $0x38] sm:$0xff]   ;;  %v375_v6 = vld [vmem:[#allocation8 + $0x30] sm:$0xff]   ;;  %v376_v7 = vld [vmem:[#allocation8 + $0x28] sm:$0xff]   ;;  %v475_v24 = vmov 0   ;;  %s476_s21 = smov [#allocation9]  }
  0x2a   :  { %344 = vmatprep.subr.bf16.mxu1 %v473_v1  ;;  %360 = vmatprep.mubr.msk.bf16.mxu1 %vm474_vm0, %v473_v1  ;;  %v377_v8 = vld [vmem:[#allocation8 + $0x20] sm:$0xff]   ;;  %v378_v9 = vld [vmem:[#allocation8 + $0x18] sm:$0xff]   ;;  %v379_v10 = vld [vmem:[#allocation8 + $0x10] sm:$0xff]   ;;  %v129_v14 = vshrl.u32 %v128_v13, 7  ;;  %s304_s22 = sshll.u32 %s476_s21, 4  ;;  %vm296_vm2 = vcmask 57344   ;;  %s305_s22 = int_to_ptr.vmem [resolvable:$true] %s304_s22 }
  0x2b   :  { %339 = vmatpush3.bf16.msra.mxu0 %v373_v2  ;;  %345 = vmatpush3.bf16.msra.mxu1 %v374_v5  ;;  %v380_v11 = vld [vmem:[#allocation8 + $0x8] sm:$0xff]   ;;  %v381_v12 = vld [vmem:[#allocation8] sm:$0xff]   ;;  %s446_s23 = scalar_lea.vmem %s305_s22, 32  ;;  %p447_p2 = scmp.lt.s32.totalorder %s305_s22, %s305_s22 }
  0x2c   :  { %346 = vmatprep.subr.bf16.mxu1 %v473_v1  ;;  %v124_v15 = vld [vmem:[%s543_s2] sm:$0x1]  ;;  %v130_v17 = vsub.s32 0, %v129_v14 }
  0x2d   :  { %v126_v16 = vpack.i.b16 %v124_v15, %v124_v15  ;;  %v316_v27 = vld [vmem:[%s545_s4] ss:$0 sm:$0xff]  ;;  %s442_s4 = scalar_lea.vmem %s305_s22, 16 }
  0x2e   :  { %341 = vmatmul.mubr.msk.bf16.vlgmr.msra.gmra.mxu0 %vm79_vm1, %v70_v4  ;;  %v325_v31 = vld [vmem:[%s546_s5] ss:$0 sm:$0xff]  ;;  %p443_p1 = scmp.ne.s32.totalorder %s305_s22, %s442_s4  ;;  %p448_p3 = scmp.lt.s32.totalorder %s446_s23, %s442_s4 }
  0x2f   :  { %347 = vmatpush3.bf16.msra.mxu1 %v375_v6  ;;  %v131_v18 = vrot.slane %v126_v16, %v130_v17  ;;  %v326_v36 = vld [vmem:[#allocation2] ss:$0 sm:$0xff] }
  0x30   :  { %348 = vmatprep.subr.bf16.mxu1 %v473_v1  ;;  %p449_p4 = por %p448_p3, %p447_p2 }
  0x32   :  { %p450_p5 = pnand %p449_p4, %p443_p1 }
  0x33   :  { %349 = vmatpush3.bf16.msra.mxu1 %v376_v7 }
  0x34   :  { %350 = vmatprep.subr.bf16.mxu1 %v473_v1 }
  0x37   :  { %351 = vmatpush3.bf16.msra.mxu1 %v377_v8 }
  0x38   :  { %352 = vmatprep.subr.bf16.mxu1 %v473_v1 }
  0x3b   :  { %353 = vmatpush3.bf16.msra.mxu1 %v378_v9 }
  0x3c   :  { %354 = vmatprep.subr.bf16.mxu1 %v473_v1 }
  0x3f   :  { %355 = vmatpush3.bf16.msra.mxu1 %v379_v10 }
  0x40   :  { %356 = vmatprep.subr.bf16.mxu1 %v473_v1 }
  0x43   :  { %357 = vmatpush3.bf16.msra.mxu1 %v380_v11 }
  0x44   :  { %358 = vmatprep.subr.bf16.mxu1 %v473_v1 }
  0x47   :  { %359 = vmatpush3.bf16.msra.mxu1 %v381_v12 }
  0xee   :  { %v117_v19 = vpop.f32.mrf.mxu0 }
  0xef   :  { %v123_v20 = vpack.c.bf16 %v117_v19, %v117_v19 }
  0xf0   :  { %v342_v21 = vpop.f32.mrf.mxu0 }
  0xf1   :  { %v132_v22 = vadd.bf16 %v131_v18, %v123_v20 }
  0xf2   :  { %v120_v23 = vpop.f32.mrf.mxu0 }
  0xf3   :  { %v133_v25 = vmax.bf16 %v475_v24, %v132_v22 }
  0xf4   :  { %v343_v26 = vpop.f32.mrf.mxu0 }
  0xf5   :  { %361 = vmatmul.mubr.bf16.vlgmr.msra.gmra.mxu1 %v133_v25 }
 0x1b5   :  { %v239_v28 = vpop.f32.mrf.mxu1 }
 0x1b6   :  { %v240_v29 = vadd.f32 %v316_v27, %v239_v28 }
 0x1b7   :  { %v362_v30 = vpop.f32.mrf.mxu1 }
 0x1b8   :  { %v245_v32 = vmax.f32 %v240_v29, 0.0 }
 0x1b9   :  { %v242_v33 = vpop.f32.mrf.mxu1 }
 0x1ba   :  { %v253_v34 = vmul.f32 %v325_v31, %v245_v32 }
 0x1bb   :  { %v363_v35 = vpop.f32.mrf.mxu1 }
 0x1bc   :  { %254 = vadd.xlane.f32.xlu0 %v253_v34 }
 0x245   :  { %v255_v37 = vpop.xlane.xlu0 %254 }
 0x246   :  { %v263_v38 = vadd.f32 %v326_v36, %v255_v37 }
 0x248   :  { %264 = vxpose.xlu0.b32.start.end [1/1] (short) (narrow) %v263_v38, 8 }
 0x2c4   :  { %v280_v39 = vpop.trf.xlu0 }
 0x2c5   :  { %297 = vst.msk [vmem:[#allocation9] sm:$0x1] %vm296_vm2, %v280_v39 }
 0x2c6   :  { %453 = shalt.err (!%p450_p5)
}
 0x2c7   :  { %307 = dma.vmem_to_hbm [thread:$0]  %s305_s22, 16, %s548_s7, [#allocation5]  }
 0x2c8   :  { %466 = dma.done.wait [#allocation5], 16  }
 0x2c9   :  { %467 = vsyncadd [#allocation5], 4294967280 }
 0x2ca   :  { %311 = vsyncpa [#allocation4], 1 }
 0x2cb   :  { %312 = vsyncpa [#allocation7], 1 }
 0x2cc   :  { %313 = vsyncpa [#allocation5], 1 }

</bundles_post_ra>
